<compile_context>
chip_gen: v7x
topology: tpu7x:2x2x1
jax: 0.10.0
libtpu: 0.0.40
codegen_flags: <defaults>
</compile_context>

<pallas_src>
import functools

import jax
import jax.numpy as jnp
from jax.experimental import pallas as pl
from jax.experimental.pallas import tpu as pltpu

EPS = 1e-5


def _vmem_capacity_bytes():
    try:
        return int(pltpu.get_tpu_info().vmem_capacity_bytes)
    except Exception:
        return 64 * 1024 * 1024  # conservative: v7x per-TC physical VMEM


_VMEM_CAP = _vmem_capacity_bytes()
# Never request more than half of physical VMEM (headroom for compiler-internal
# scratch / pipelining).  v5e/v6e (128 MiB) -> 64 MiB, v7x (64 MiB) -> 32 MiB.
_VMEM_LIMIT = min(_VMEM_CAP // 2, 64 * 1024 * 1024)
# Bigger blocks on 128-MiB parts amortize the ~0.35 us per-grid-step overhead.
_TILE_BYTES = 8 * 1024 * 1024 if _VMEM_CAP >= 100 * 1024 * 1024 else 4 * 1024 * 1024


def _divisors(n):
    ds = set()
    i = 1
    while i * i <= n:
        if n % i == 0:
            ds.add(i)
            ds.add(n // i)
        i += 1
    return sorted(ds, reverse=True)


def _pick_tile(dim, max_elems, align):
    """Largest divisor of `dim` that is <= max_elems, preferring multiples of
    `align`.  If dim itself fits the budget, use the full dim (always legal for
    BlockSpec).  Never silently exceeds the byte budget."""
    max_elems = max(1, int(max_elems))
    if dim <= max_elems:
        return dim
    divs = _divisors(dim)
    for d in divs:
        if d <= max_elems and d % align == 0:
            return d
    for d in divs:
        if d <= max_elems:
            return d
    return 1  # unreachable: 1 always divides dim


# --------------------------------------------------------------------------- #
# Kernels
# --------------------------------------------------------------------------- #
def _stats_kernel(x_ref, sum_out_ref, sq_out_ref, sum_acc, sq_acc):
    """Per-channel sum / sum-of-squares, emitted as per-N-tile partials.

    x_ref: (n_tile, C, hw_tile) block of the (N, C, H*W) view.
    Outputs: (1, C, 1) blocks of (N//n_tile, C, 1) partial-sum arrays.
    Scratch: (C, hw_tile) f32 accumulators -> per-step work is pure VPU adds;
    the single cross-lane (XLU) reduction happens only at the last HW step.
    """
    hi = pl.program_id(1)

    @pl.when(hi == 0)
    def _init():
        sum_acc[...] = jnp.zeros_like(sum_acc)
        sq_acc[...] = jnp.zeros_like(sq_acc)

    x = x_ref[...].astype(jnp.float32)           # (n_tile, C, hw_tile)
    sum_acc[...] += jnp.sum(x, axis=0)           # (C, hw_tile)   VPU only
    sq_acc[...] += jnp.sum(x * x, axis=0)        # (C, hw_tile)   VPU only

    @pl.when(hi == pl.num_programs(1) - 1)
    def _finalize():
        sum_out_ref[...] = jnp.sum(sum_acc[...], axis=1, keepdims=True)[None]  # (1, C, 1)
        sq_out_ref[...] = jnp.sum(sq_acc[...], axis=1, keepdims=True)[None]    # (1, C, 1)


def _norm_relu_kernel(x_ref, scale_ref, bias_ref, o_ref):
    """y = relu(x * scale + bias).  Works for both the (N*C, HW) row view
    (scale/bias blocks (row_tile, 1)) and the (N, C*HW) lane view
    (scale/bias blocks (1, lane_tile)) purely via broadcasting."""
    y = x_ref[...].astype(jnp.float32) * scale_ref[...] + bias_ref[...]
    o_ref[...] = jnp.maximum(y, 0.0).astype(o_ref.dtype)


def _fused_bn_relu_kernel(x_ref, gamma_ref, beta_ref, o_ref, *, inv_m, eps):
    """Single-pass BN+ReLU with the whole activation resident in VMEM.
    Uses centered variance (better numerical parity with PyTorch)."""
    x = x_ref[...].astype(jnp.float32)                                   # (N, C, HW)
    mean = jnp.sum(jnp.sum(x, axis=2, keepdims=True), axis=0, keepdims=True) * inv_m
    xc = x - mean
    var = jnp.sum(jnp.sum(xc * xc, axis=2, keepdims=True), axis=0, keepdims=True) * inv_m
    scale = gamma_ref[...] * jax.lax.rsqrt(var + eps)                    # (1, C, 1)
    y = xc * scale + beta_ref[...]
    o_ref[...] = jnp.maximum(y, 0.0).astype(o_ref.dtype)


# --------------------------------------------------------------------------- #
# Wrappers
# --------------------------------------------------------------------------- #
def _bn_relu_fused(x_nchw, gamma, beta, eps):
    N, C, H, W = x_nchw.shape
    HW = H * W
    x3 = x_nchw.reshape(N, C, HW)                    # free reshape
    g3 = gamma.reshape(1, C, 1).astype(jnp.float32)
    b3 = beta.reshape(1, C, 1).astype(jnp.float32)
    kernel = functools.partial(_fused_bn_relu_kernel,
                               inv_m=1.0 / float(N * HW), eps=float(eps))
    out3 = pl.pallas_call(
        kernel,
        out_shape=jax.ShapeDtypeStruct((N, C, HW), x_nchw.dtype),
        in_specs=[pl.BlockSpec(memory_space=pltpu.MemorySpace.VMEM)] * 3,
        out_specs=pl.BlockSpec(memory_space=pltpu.MemorySpace.VMEM),
        compiler_params=pltpu.CompilerParams(vmem_limit_bytes=_VMEM_LIMIT),
    )(x3, g3, b3)
    return out3.reshape(N, C, H, W)


def _bn_relu_tiled(x_nchw, gamma, beta, eps):
    N, C, H, W = x_nchw.shape
    HW = H * W
    itemsize = jnp.dtype(x_nchw.dtype).itemsize

    # ---------- pass 1: per-channel sum / sum-of-squares (per-N-tile partials) ----------
    x3 = x_nchw.reshape(N, C, HW)                    # free reshape
    # budget HW tiles against the f32 scratch accumulators (itemsize floor = 4)
    hw_tile = _pick_tile(HW, max(128, _TILE_BYTES // (C * 4)), 128)
    n_tile = _pick_tile(N, max(1, _TILE_BYTES // (C * hw_tile * itemsize)), 1)
    n_grid = N // n_tile

    sums_p, sqs_p = pl.pallas_call(
        _stats_kernel,
        out_shape=(jax.ShapeDtypeStruct((n_grid, C, 1), jnp.float32),
                   jax.ShapeDtypeStruct((n_grid, C, 1), jnp.float32)),
        grid_spec=pltpu.PrefetchScalarGridSpec(
            num_scalar_prefetch=0,
            grid=(n_grid, HW // hw_tile),
            in_specs=[pl.BlockSpec((n_tile, C, hw_tile),
                                   lambda ni, hi: (ni, 0, hi))],
            out_specs=(pl.BlockSpec((1, C, 1), lambda ni, hi: (ni, 0, 0)),
                       pl.BlockSpec((1, C, 1), lambda ni, hi: (ni, 0, 0))),
            scratch_shapes=[pltpu.VMEM((C, hw_tile), jnp.float32),
                            pltpu.VMEM((C, hw_tile), jnp.float32)]),
        compiler_params=pltpu.CompilerParams(
            dimension_semantics=("parallel", "arbitrary"),   # ni shards across TCs (v7x)
            vmem_limit_bytes=_VMEM_LIMIT),
    )(x3)

    # ---------- tiny per-channel math (C elements, plain JAX) ----------
    sums = jnp.sum(sums_p[:, :, 0], axis=0)          # (C,)
    sqs = jnp.sum(sqs_p[:, :, 0], axis=0)            # (C,)
    inv_m = 1.0 / float(N * HW)                      # global divisor, applied once
    mean = sums * inv_m
    # TODO(synk): E[x^2] - mean^2 (f32 accumulation) can lose precision vs PyTorch's
    # centered variance when |mean| >> std; a centered second stats pass would fix it.
    var = jnp.maximum(sqs * inv_m - mean * mean, 0.0)
    inv_std = jax.lax.rsqrt(var + eps)
    scale = gamma.astype(jnp.float32) * inv_std       # (C,)
    bias = beta.astype(jnp.float32) - mean * scale    # (C,)

    # ---------- pass 2: fused scale+bias+ReLU, lane-dense, fully parallel ----------
    if HW % 128 == 0:
        # (N*C, HW) row view with per-row (per (n,c)) scale/bias.
        R = N * C
        x2 = x_nchw.reshape(R, HW)
        hw_t = _pick_tile(HW, max(128, _TILE_BYTES // (8 * itemsize)), 128)
        row_t = _pick_tile(R, max(8, _TILE_BYTES // (hw_t * itemsize)), 8)
        scale_v = jnp.broadcast_to(scale[None, :], (N, C)).reshape(R, 1)
        bias_v = jnp.broadcast_to(bias[None, :], (N, C)).reshape(R, 1)
        grid2 = (R // row_t, HW // hw_t)
        in_specs = [pl.BlockSpec((row_t, hw_t), lambda ri, hi: (ri, hi)),
                    pl.BlockSpec((row_t, 1), lambda ri, hi: (ri, 0)),
                    pl.BlockSpec((row_t, 1), lambda ri, hi: (ri, 0))]
        out_spec = pl.BlockSpec((row_t, hw_t), lambda ri, hi: (ri, hi))
        out_shape2 = jax.ShapeDtypeStruct((R, HW), x_nchw.dtype)
    else:
        # Small / awkward H*W: keep output stores lane-dense by flattening C*H*W
        # onto the lane axis and using per-lane scale/bias vectors.
        L = C * HW
        x2 = x_nchw.reshape(N, L)
        lane_t = _pick_tile(L, max(128, _TILE_BYTES // (8 * itemsize)), 128)
        n_t = _pick_tile(N, max(1, _TILE_BYTES // (lane_t * itemsize)), 1)
        scale_v = jnp.repeat(scale, HW)[None, :]      # (1, C*HW): channel value per lane
        bias_v = jnp.repeat(bias, HW)[None, :]
        grid2 = (N // n_t, L // lane_t)
        in_specs = [pl.BlockSpec((n_t, lane_t), lambda ni, li: (ni, li)),
                    pl.BlockSpec((1, lane_t), lambda ni, li: (0, li)),
                    pl.BlockSpec((1, lane_t), lambda ni, li: (0, li))]
        out_spec = pl.BlockSpec((n_t, lane_t), lambda ni, li: (ni, li))
        out_shape2 = jax.ShapeDtypeStruct((N, L), x_nchw.dtype)

    out2 = pl.pallas_call(
        _norm_relu_kernel,
        out_shape=out_shape2,
        grid_spec=pl.GridSpec(grid=grid2, in_specs=in_specs, out_specs=out_spec),
        compiler_params=pltpu.CompilerParams(
            dimension_semantics=("parallel", "parallel"),
            vmem_limit_bytes=_VMEM_LIMIT),
    )(x2, scale_v, bias_v)
    return out2.reshape(N, C, H, W)


def bn_relu(x, gamma, beta, eps=EPS, allow_fused=True):
    """BatchNorm (training-mode batch stats) + ReLU.
    x: (N, C, H, W) for BatchNorm2d, or (N, C, L) for BatchNorm1d (viewed as W=1)."""
    squeeze_1d = (x.ndim == 3)
    if squeeze_1d:
        x = x[..., None]
    N, C, H, W = x.shape
    itemsize = jnp.dtype(x.dtype).itemsize
    numel = N * C * H * W
    # fused path holds x in + out (input dtype) plus ~2 f32 temporaries in VMEM
    fused_workset = numel * (2 * itemsize + 8)
    if allow_fused and fused_workset <= _VMEM_LIMIT // 2:
        out = _bn_relu_fused(x, gamma, beta, eps)
    else:
        out = _bn_relu_tiled(x, gamma, beta, eps)
    # TODO(synk): PyTorch training-mode BN also updates running_mean/running_var
    # (momentum, unbiased var); those stateful buffers don't affect this forward output.
    return out[..., 0] if squeeze_1d else out


def bn_relu_reference(x, gamma, beta, eps=EPS):
    mean = jnp.mean(x, axis=(0, 2, 3), keepdims=True)
    var = jnp.mean((x - mean) ** 2, axis=(0, 2, 3), keepdims=True)  # biased
    y = (x - mean) / jnp.sqrt(var + eps)
    y = y * gamma.reshape(1, -1, 1, 1) + beta.reshape(1, -1, 1, 1)
    return jnp.maximum(y, 0.0)


if __name__ == "__main__":
    key = jax.random.PRNGKey(0)
    N, C, H, W = 2, 4, 16, 16
    x = jax.random.normal(key, (N, C, H, W), dtype=jnp.float32)

    # PyTorch BatchNorm2d default affine init
    gamma = jnp.ones((C,), dtype=jnp.float32)
    beta = jnp.zeros((C,), dtype=jnp.float32)

    ref = bn_relu_reference(x, gamma, beta)

    # 1) fused fast path (whole activation resident in VMEM)
    out_fused = jax.block_until_ready(bn_relu(x, gamma, beta))
    assert out_fused.shape == (N, C, H, W)
    assert jnp.allclose(out_fused, ref, atol=1e-5, rtol=1e-5)

    # 2) tiled two-pass path, lane-dense H*W (row view)
    out_tiled = jax.block_until_ready(bn_relu(x, gamma, beta, allow_fused=False))
    assert jnp.allclose(out_tiled, ref, atol=1e-5, rtol=1e-5)

    # 3) tiled path with awkward H*W (exercises the lane-density fallback view)
    x_odd = jax.random.normal(jax.random.PRNGKey(0), (2, 4, 10, 10), dtype=jnp.float32)
    ref_odd = bn_relu_reference(x_odd, gamma, beta)
    out_odd = jax.block_until_ready(bn_relu(x_odd, gamma, beta, allow_fused=False))
    assert jnp.allclose(out_odd, ref_odd, atol=1e-5, rtol=1e-5)

    print("KERNEL_OK")
</pallas_src>

<mosaic_0001>
module attributes {stable_mosaic.version = 11 : i64} {
  func.func @_fused_bn_relu_kernel(%arg0: memref<2x4x256xf32, #tpu.memory_space<vmem>>, %arg1: memref<1x4x1xf32, #tpu.memory_space<vmem>>, %arg2: memref<1x4x1xf32, #tpu.memory_space<vmem>>, %arg3: memref<2x4x256xf32, #tpu.memory_space<vmem>>) attributes {dimension_semantics = [], scalar_prefetch = 0 : i64, scratch_operands = 0 : i64, tpu.core_type = #tpu.core_type<tc>} {
    %c0 = arith.constant 0 : index
    %c0_0 = arith.constant 0 : index
    %c0_1 = arith.constant 0 : index
    %0 = vector.load %arg0[%c0, %c0_0, %c0_1] : memref<2x4x256xf32, #tpu.memory_space<vmem>>, vector<2x4x256xf32>
    %cst = arith.constant dense<0.000000e+00> : vector<2x4xf32>
    %1 = vector.multi_reduction <add>, %0, %cst [2] : vector<2x4x256xf32> to vector<2x4xf32>
    %2 = vector.shape_cast %1 : vector<2x4xf32> to vector<2x4x1xf32>
    %cst_2 = arith.constant dense<0.000000e+00> : vector<4x1xf32>
    %3 = vector.multi_reduction <add>, %2, %cst_2 [0] : vector<2x4x1xf32> to vector<4x1xf32>
    %4 = vector.shape_cast %3 : vector<4x1xf32> to vector<1x4x1xf32>
    %cst_3 = arith.constant 0.001953125 : f32
    %5 = vector.broadcast %cst_3 : f32 to vector<1x4x1xf32>
    %6 = arith.mulf %4, %5 : vector<1x4x1xf32>
    %7 = vector.broadcast %6 : vector<1x4x1xf32> to vector<2x4x256xf32>
    %8 = arith.subf %0, %7 : vector<2x4x256xf32>
    %9 = arith.mulf %8, %8 : vector<2x4x256xf32>
    %cst_4 = arith.constant dense<0.000000e+00> : vector<2x4xf32>
    %10 = vector.multi_reduction <add>, %9, %cst_4 [2] : vector<2x4x256xf32> to vector<2x4xf32>
    %11 = vector.shape_cast %10 : vector<2x4xf32> to vector<2x4x1xf32>
    %cst_5 = arith.constant dense<0.000000e+00> : vector<4x1xf32>
    %12 = vector.multi_reduction <add>, %11, %cst_5 [0] : vector<2x4x1xf32> to vector<4x1xf32>
    %13 = vector.shape_cast %12 : vector<4x1xf32> to vector<1x4x1xf32>
    %cst_6 = arith.constant 0.001953125 : f32
    %14 = vector.broadcast %cst_6 : f32 to vector<1x4x1xf32>
    %15 = arith.mulf %13, %14 : vector<1x4x1xf32>
    %c0_7 = arith.constant 0 : index
    %c0_8 = arith.constant 0 : index
    %c0_9 = arith.constant 0 : index
    %16 = vector.load %arg1[%c0_7, %c0_8, %c0_9] : memref<1x4x1xf32, #tpu.memory_space<vmem>>, vector<1x4x1xf32>
    %cst_10 = arith.constant 9.99999974E-6 : f32
    %17 = vector.broadcast %cst_10 : f32 to vector<1x4x1xf32>
    %18 = arith.addf %15, %17 : vector<1x4x1xf32>
    %19 = math.rsqrt %18 : vector<1x4x1xf32>
    %20 = arith.mulf %16, %19 : vector<1x4x1xf32>
    %21 = vector.broadcast %20 : vector<1x4x1xf32> to vector<2x4x256xf32>
    %22 = arith.mulf %8, %21 : vector<2x4x256xf32>
    %c0_11 = arith.constant 0 : index
    %c0_12 = arith.constant 0 : index
    %c0_13 = arith.constant 0 : index
    %23 = vector.load %arg2[%c0_11, %c0_12, %c0_13] : memref<1x4x1xf32, #tpu.memory_space<vmem>>, vector<1x4x1xf32>
    %24 = vector.broadcast %23 : vector<1x4x1xf32> to vector<2x4x256xf32>
    %25 = arith.addf %22, %24 : vector<2x4x256xf32>
    %cst_14 = arith.constant 0.000000e+00 : f32
    %26 = vector.broadcast %cst_14 : f32 to vector<2x4x256xf32>
    %27 = arith.maximumf %25, %26 : vector<2x4x256xf32>
    %c0_15 = arith.constant 0 : index
    %c0_16 = arith.constant 0 : index
    %c0_17 = arith.constant 0 : index
    %28 = vector.load %arg3[%c0_15, %c0_16, %c0_17] : memref<2x4x256xf32, #tpu.memory_space<vmem>>, vector<2x4x256xf32>
    tpu.vector_store %arg3[%c0_15, %c0_16, %c0_17], %27 {strides = array<i32>} : memref<2x4x256xf32, #tpu.memory_space<vmem>>, vector<2x4x256xf32>,
    return
  }
}

</mosaic_0001>

<bundles_post_ra>
// kernel: tpu_custom_call.1
= control target key start
LH: loop header
LB: loop body
LE: loop exit
PB: predicated region body
PF: predicated region fallthrough
CT: control target
= control target key end

     0   :  { %8 = vsyncpa [#allocation3], 0  ;;  %s273_s0 = inlined_call_operand.hbm [shape: f32[2,4,256], index: 0, kind: input, shape index: {}]   ;;  %s274_s1 = inlined_call_operand.vmem [shape: f32[1,4,1], index: 1, kind: input, shape index: {}]   ;;  %s275_s2 = inlined_call_operand.vmem [shape: f32[1,4,1], index: 2, kind: input, shape index: {}]   ;;  %s276_s3 = inlined_call_operand.hbm [shape: f32[2,4,256], index: 3, kind: output, shape index: {}]  }
   0x1   :  { %9 = vsyncpa [#allocation4], 0  ;;  %s199_s12 = smov [#allocation2]   ;;  %s151_s16 = scalar_lea.hbm %s273_s0, 256 }
   0x2   :  { %s15_s13 = sshll.u32 %s199_s12, 4  ;;  %p152_p0 = scmp.ne.s32.totalorder %s273_s0, %s151_s16  ;;  %s16_s13 = int_to_ptr.vmem [resolvable:$true] %s15_s13 }
   0x3   :  { %p155_p1 = scmp.lt.u32.totalorder %s151_s16, %s273_s0 }
   0x5   :  { %p157_p2 = pnand %p155_p1, %p152_p0 }
   0x7   :  { %160 = shalt.err (!%p157_p2)
}
   0x8   :  { %s161_s21 = scalar_lea.vmem %s16_s13, 256  ;;  %p166_p4 = scmp.lt.s32.totalorder %s16_s13, %s16_s13 }
   0x9   :  { %p162_p3 = scmp.ne.s32.totalorder %s16_s13, %s161_s21  ;;  %p167_p5 = scmp.lt.s32.totalorder %s161_s21, %s161_s21 }
   0xb   :  { %p168_p6 = por %p167_p5, %p166_p4 }
   0xd   :  { %p169_p7 = pnand %p168_p6, %p162_p3 }
   0xf   :  { %172 = shalt.err (!%p169_p7)
}
  0x10   :  { %s200_s22 = smov 128   ;;  %s201_s23 = smov 8  }
  0x11   :  { %21 = dma.hbm_to_vmem [thread:$0]  %s273_s0, 256, %s16_s13, [#allocation3], %s200_s22, %s200_s22, %s201_s23  }
  0x12   :  { %195 = dma.done.wait [#allocation3], 256  }
  0x13   :  { %196 = vsyncadd [#allocation3], 4294967040  ;;  %vm37_vm0 = vcmask 1043456   ;;  %v29_v0 = vld [vmem:[#allocation2] sm:$0xff]  ;;  %v30_v1 = vld [vmem:[#allocation2 + $0x8] sm:$0xff]  ;;  %v56_v12 = vlaneseq  ;;  %v203_v35 = vmov 0  }
  0x14   :  { %v33_v2 = vcombine.high %v29_v0, %v29_v0  ;;  %v38_v3 = vsel %vm37_vm0, %v29_v0, 0.0  ;;  %v34_v4 = vcombine.high %v30_v1, %v30_v1  ;;  %v43_v6 = vsel %vm37_vm0, %v30_v1, 0.0  ;;  %145 = vset.pattern.permute.xlu0 %v203_v35  ;;  %146 = vset.pattern.permute.xlu1 %v203_v35  ;;  %v103_v36 = vld [vmem:[%s275_s2] sm:$0xf]  ;;  %s204_s2 = smov [#allocation5]  }
  0x15   :  { %v202_v10 = vmov 839922192   ;;  %v57_v15 = vshrl.u32 %v56_v12, 7  ;;  %v85_v44 = vld [vmem:[%s274_s1] sm:$0xf]  ;;  %s127_s29 = sshll.u32 %s204_s2, 4  ;;  %s128_s29 = int_to_ptr.vmem [resolvable:$true] %s127_s29 }
  0x16   :  { %v39_v5 = vsel %vm37_vm0, %v33_v2, 0.0  ;;  %v44_v7 = vsel %vm37_vm0, %v34_v4, 0.0  ;;  %v54_v11 = vunpack.c.l.s4 %v202_v10  ;;  %s173_s30 = scalar_lea.vmem %s128_s29, 256  ;;  %p178_p9 = scmp.lt.s32.totalorder %s128_s29, %s128_s29 }
  0x17   :  { %v40_v8 = vadd.f32 %v39_v5, %v38_v3  ;;  %v45_v9 = vadd.f32 %v44_v7, %v43_v6  ;;  %p174_p8 = scmp.ne.s32.totalorder %s128_s29, %s173_s30  ;;  %p179_p10 = scmp.lt.s32.totalorder %s173_s30, %s173_s30 }
  0x18   :  { %v55_v14 = vunpack.c.0.s8 %v54_v11 }
  0x19   :  { %41 = vadd.xlane.f32.xlu0 %v40_v8  ;;  %p180_p11 = por %p179_p10, %p178_p9 }
  0x1a   :  { %v58_v19 = vsub.s32 %v55_v14, %v57_v15 }
  0x1b   :  { %p181_p12 = pnand %p180_p11, %p174_p8 }
  0x1d   :  { %46 = vadd.xlane.f32.xlu0 %v45_v9 }
  0xa6   :  { %v42_v13 = vpop.xlane.xlu0 %41 }
  0xa7   :  { %v48_v17 = vsel %vm37_vm0, %v42_v13, 0.0 }
  0xaa   :  { %v47_v16 = vpop.xlane.xlu0 %46 }
  0xab   :  { %v49_v18 = vsel %vm37_vm0, %v47_v16, 0.0 }
  0xac   :  { %v50_v20 = vadd.f32 %v49_v18, %v48_v17 }
  0xae   :  { %v51_v21 = vmul.f32 0.001953125, %v50_v20 }
  0xb0   :  { %v59_v22 = vrot.slane %v51_v21, %v58_v19 }
  0xb2   :  { %v62_v23 = vsub.f32 %v30_v1, %v59_v22  ;;  %v61_v24 = vsub.f32 %v29_v0, %v59_v22 }
  0xb4   :  { %v63_v25 = vmul.f32 %v61_v24, %v61_v24  ;;  %v64_v26 = vmul.f32 %v62_v23, %v62_v23 }
  0xb6   :  { %v67_v27 = vcombine.high %v63_v25, %v63_v25  ;;  %v68_v28 = vcombine.high %v64_v26, %v64_v26  ;;  %v71_v29 = vsel %vm37_vm0, %v63_v25, 0.0  ;;  %v76_v33 = vsel %vm37_vm0, %v64_v26, 0.0 }
  0xb8   :  { %v72_v30 = vsel %vm37_vm0, %v67_v27, 0.0  ;;  %v77_v32 = vsel %vm37_vm0, %v68_v28, 0.0 }
  0xb9   :  { %v73_v31 = vadd.f32 %v72_v30, %v71_v29  ;;  %v78_v34 = vadd.f32 %v77_v32, %v76_v33 }
  0xbb   :  { %74 = vadd.xlane.f32.xlu1 %v73_v31 }
  0xbf   :  { %79 = vadd.xlane.f32.xlu1 %v78_v34 }
  0xd0   :  { %106 = vperm.xlu1 %146, %v103_v36  }
 0x148   :  { %v75_v37 = vpop.xlane.xlu1 %74 }
 0x149   :  { %v81_v39 = vsel %vm37_vm0, %v75_v37, 0.0 }
 0x14c   :  { %v80_v38 = vpop.xlane.xlu1 %79 }
 0x14d   :  { %v82_v40 = vsel %vm37_vm0, %v80_v38, 0.0 }
 0x14e   :  { %v83_v41 = vadd.f32 %v82_v40, %v81_v39 }
 0x150   :  { %v84_v42 = vmul.f32 0.001953125, %v83_v41  ;;  %v107_v47 = vpop.permute.xlu1 %106 }
 0x151   :  { %v114_v50 = vrot.slane %v107_v47, %v58_v19 }
 0x152   :  { %v86_v43 = vadd.f32 1e-05, %v84_v42 }
 0x154   :  { %149 = vrsqrt.f32 %v86_v43 }
 0x15e   :  { %v150_v45 = vpop.eup %149 }
 0x15f   :  { %v88_v46 = vmul.f32 %v150_v45, %v85_v44 }
 0x161   :  { %91 = vperm.xlu0 %145, %v88_v46  }
 0x1e0   :  { %v92_v48 = vpop.permute.xlu0 %91 }
 0x1e1   :  { %v99_v49 = vrot.slane %v92_v48, %v58_v19 }
 0x1e3   :  { %v101_v51 = vmul.f32 %v99_v49, %v61_v24  ;;  %v102_v52 = vmul.f32 %v99_v49, %v62_v23 }
 0x1e5   :  { %v116_v53 = vadd.f32 %v114_v50, %v101_v51  ;;  %v117_v54 = vadd.f32 %v114_v50, %v102_v52 }
 0x1e7   :  { %v118_v55 = vmax.f32 %v116_v53, 0.0  ;;  %v119_v56 = vmax.f32 %v117_v54, 0.0 }
 0x1e9   :  { %120 = vst [vmem:[#allocation5] sm:$0xff] %v118_v55  ;;  %121 = vst [vmem:[#allocation5 + $0x8] sm:$0xff] %v119_v56 }
 0x1ea   :  { %184 = shalt.err (!%p181_p12)
}
 0x1eb   :  { %s185_s5 = scalar_lea.hbm %s276_s3, 256 }
 0x1ec   :  { %p186_p13 = scmp.ne.s32.totalorder %s276_s3, %s185_s5  ;;  %p189_p0 = scmp.lt.u32.totalorder %s185_s5, %s276_s3 }
 0x1ee   :  { %p191_p1 = pnand %p189_p0, %p186_p13 }
 0x1f0   :  { %194 = shalt.err (!%p191_p1)
}
 0x1f1   :  { %133 = dma.vmem_to_hbm [thread:$0]  %s128_s29, 256, %s276_s3, [#allocation4], %s200_s22, %s200_s22, %s201_s23  }
 0x1f2   :  { %197 = dma.done.wait [#allocation4], 256  }
 0x1f3   :  { %198 = vsyncadd [#allocation4], 4294967040 }
 0x1f4   :  { %137 = vsyncpa [#allocation3], 1 }
 0x1f5   :  { %138 = vsyncpa [#allocation4], 1 }

</bundles_post_ra>
